<compile_context>
chip_gen: v7x
topology: tpu7x:2x2x1
jax: 0.10.0
libtpu: 0.0.40
codegen_flags: <defaults>
</compile_context>

<pallas_src>
import functools
import numpy as np
import jax
import jax.numpy as jnp
from jax.experimental import pallas as pl
from jax.experimental.pallas import tpu as pltpu

# ----------------------------- configuration --------------------------------
DIM = 32                     # C
NUM_HEADS = 4                # H
HEAD_DIM = DIM // NUM_HEADS  # M = 8
WINDOW = 4                   # attention window W (module default is 7; small here)
NGLO = 1                     # number of global tokens
NEG = -1e30                  # additive mask value for invalid keys
HI = jax.lax.Precision.HIGHEST


# ----------------------------- fused linear ----------------------------------
def _linear_kernel(x_ref, w_ref, b_ref, o_ref):
    # y = x @ W + b (PyTorch nn.Linear with weight stored as (in, out))
    o_ref[...] = (jnp.dot(x_ref[...], w_ref[...],
                          preferred_element_type=jnp.float32)
                  + b_ref[...]).astype(o_ref.dtype)


def linear_pallas(x2d, w, b):
    """Single-step matmul: everything fits in VMEM at these sizes."""
    R, Cin = x2d.shape
    Cout = w.shape[1]
    return pl.pallas_call(
        _linear_kernel,
        out_shape=jax.ShapeDtypeStruct((R, Cout), jnp.float32),
        grid=(1,),
        in_specs=[pl.BlockSpec((R, Cin), lambda i: (0, 0)),
                  pl.BlockSpec((Cin, Cout), lambda i: (0, 0)),
                  pl.BlockSpec((1, Cout), lambda i: (0, 0))],
        out_specs=pl.BlockSpec((R, Cout), lambda i: (0, 0)),
    )(x2d, w, b.reshape(1, Cout))


def _fused_linear(x2d, ws, bs):
    """Concatenate several (Cin, *) projections of the same input into one
    lane-dense matmul (output columns padded to a multiple of 128)."""
    w = jnp.concatenate(ws, axis=1)
    b = jnp.concatenate(bs)
    cout = w.shape[1]
    cpad = ((cout + 127) // 128) * 128
    w = jnp.pad(w, ((0, 0), (0, cpad - cout)))
    b = jnp.pad(b, (0, cpad - cout))
    return linear_pallas(x2d, w, b)[:, :cout]


# ----------------------------- attention kernel ------------------------------
def _attn_kernel(q_ref, kimg_ref, vimg_ref, kg_ref, vg_ref, mask_ref,
                 qg_ref, kgf_ref, vgf_ref, oloc_ref, oglo_ref, *, mxp, myp):
    """One grid step = a slice of (batch*head).  Local branch: all chunks of
    that slice batched in one masked joint softmax over
    [9*W2 neighbourhood keys | global keys].  Global branch: Nglo tokens
    attend to all N tokens."""
    BHt, Nc, W2, M = q_ref.shape
    GPAD = kg_ref.shape[1]
    K9 = 9 * W2
    Ktot = K9 + GPAD
    assert mask_ref.shape[-1] == Ktot
    mx, my = mxp - 2, myp - 2
    B2 = BHt * Nc

    def neighborhood(img_ref, glo_ref):
        # halo-padded chunk image (BHt, mxp*myp, W2, M) -> per-chunk key/value
        # set [9*W2 local | GPAD global slots], gathered entirely in VMEM.
        img = img_ref[...].reshape(BHt, mxp, myp, W2, M)
        parts = [img[:, 1 + dm:1 + dm + mx, 1 + dn:1 + dn + my]
                 for dm in (-1, 0, 1) for dn in (-1, 0, 1)]
        nbh = jnp.concatenate(parts, axis=3).reshape(BHt, Nc, K9, M)
        glo = jnp.broadcast_to(glo_ref[...][:, None], (BHt, Nc, GPAD, M))
        return jnp.concatenate([nbh, glo], axis=2).reshape(B2, Ktot, M)

    k_all = neighborhood(kimg_ref, kg_ref)
    v_all = neighborhood(vimg_ref, vg_ref)

    # ---- local branch: joint softmax over [local 3x3 | global] keys --------
    q2 = q_ref[...].reshape(B2, W2, M)
    s = jnp.einsum('bqd,bkd->bqk', q2, k_all,
                   preferred_element_type=jnp.float32)            # (B2,W2,Ktot)
    s = s.reshape(BHt, Nc, W2, Ktot) + mask_ref[...][None]        # additive mask
    p = jnp.exp(s - jnp.max(s, axis=-1, keepdims=True))
    inv = pl.reciprocal(jnp.sum(p, axis=-1, keepdims=True), approx=True)
    o = jnp.einsum('bqk,bkd->bqd', p.reshape(B2, W2, Ktot), v_all,
                   preferred_element_type=jnp.float32)
    oloc_ref[...] = (o.reshape(BHt, Nc, W2, M) * inv).astype(oloc_ref.dtype)

    # ---- global branch: Nglo global tokens attend to all N tokens ----------
    s0 = jnp.einsum('bgd,bnd->bgn', qg_ref[...], kgf_ref[...],
                    preferred_element_type=jnp.float32)
    p0 = jnp.exp(s0 - jnp.max(s0, axis=-1, keepdims=True))
    p0 = p0 * pl.reciprocal(jnp.sum(p0, axis=-1, keepdims=True), approx=True)
    oglo_ref[...] = jnp.einsum('bgn,bnd->bgd', p0, vgf_ref[...],
                               preferred_element_type=jnp.float32
                               ).astype(oglo_ref.dtype)


def attention_pallas(q_ch, k_img, v_img, k_glo, v_glo, mask, qg, kgf, vgf,
                     mxp, myp):
    BH, Nc, W2, M = q_ch.shape
    GPAD = k_glo.shape[1]
    Nglo = qg.shape[1]
    N = kgf.shape[1]
    Ktot = mask.shape[-1]
    G = 2 if BH % 2 == 0 else 1          # >=2 parallel steps => both TCs on v7x
    BHt = BH // G

    kernel = functools.partial(_attn_kernel, mxp=mxp, myp=myp)
    return pl.pallas_call(
        kernel,
        out_shape=(jax.ShapeDtypeStruct((BH, Nc, W2, M), jnp.float32),
                   jax.ShapeDtypeStruct((BH, Nglo, M), jnp.float32)),
        grid=(G,),
        in_specs=[
            pl.BlockSpec((BHt, Nc, W2, M), lambda g: (g, 0, 0, 0)),        # q chunks
            pl.BlockSpec((BHt, mxp * myp, W2, M), lambda g: (g, 0, 0, 0)), # k halo img
            pl.BlockSpec((BHt, mxp * myp, W2, M), lambda g: (g, 0, 0, 0)), # v halo img
            pl.BlockSpec((BHt, GPAD, M), lambda g: (g, 0, 0)),             # global k
            pl.BlockSpec((BHt, GPAD, M), lambda g: (g, 0, 0)),             # global v
            pl.BlockSpec((Nc, 1, Ktot), lambda g: (0, 0, 0)),              # additive mask
            pl.BlockSpec((BHt, Nglo, M), lambda g: (g, 0, 0)),             # global q
            pl.BlockSpec((BHt, N, M), lambda g: (g, 0, 0)),                # kv_global k
            pl.BlockSpec((BHt, N, M), lambda g: (g, 0, 0)),                # kv_global v
        ],
        out_specs=(pl.BlockSpec((BHt, Nc, W2, M), lambda g: (g, 0, 0, 0)),
                   pl.BlockSpec((BHt, Nglo, M), lambda g: (g, 0, 0))),
        compiler_params=pltpu.CompilerParams(
            dimension_semantics=("parallel",),
            vmem_limit_bytes=32 * 1024 * 1024),
    )(q_ch, k_img, v_img, k_glo, v_glo, mask, qg, kgf, vgf)


# ------------------------------- masks ----------------------------------------
def _local_key_validity(mx, my, nx, ny, w):
    """(Nc, 9*w*w) additive mask: 0 for valid keys, NEG for out-of-grid
    neighbour chunks or padded key positions (mask_invalid_locations with
    exact=0, mode=0)."""
    m_idx = np.arange(mx)[:, None, None, None, None]
    n_idx = np.arange(my)[None, :, None, None, None]
    dm = (np.arange(9) // 3 - 1)[None, None, :, None, None]
    dn = (np.arange(9) % 3 - 1)[None, None, :, None, None]
    li = np.arange(w)[None, None, None, :, None]
    lj = np.arange(w)[None, None, None, None, :]
    cm = m_idx + dm
    cn = n_idx + dn
    valid = ((cm >= 0) & (cm < mx) & (cn >= 0) & (cn < my)
             & (cm * w + li < nx) & (cn * w + lj < ny))
    return np.where(valid, 0.0, NEG).astype(np.float32).reshape(mx * my, 9 * w * w)


def _kernel_mask(mx, my, nx, ny, w, nglo, gpad):
    """(Nc, 1, 9*w*w + gpad): [local neighbourhood | global (valid) | pad]."""
    loc = _local_key_validity(mx, my, nx, ny, w)
    glo = np.full((mx * my, gpad), NEG, np.float32)
    glo[:, :nglo] = 0.0
    return jnp.asarray(np.concatenate([loc, glo], axis=-1)[:, None, :])


# ------------------------------- forward (pallas) -----------------------------
def _forward_pallas(x, nx, ny, params):
    B, N, C = x.shape
    H, M, W, Nglo = NUM_HEADS, HEAD_DIM, WINDOW, NGLO
    scale = M ** (-0.5)
    W2 = W * W
    Nloc = nx * ny
    assert Nglo + Nloc == N, "Global dimension does not match!"
    padx = (W - nx % W) % W
    pady = (W - ny % W) % W
    mx, my = (nx + padx) // W, (ny + pady) // W
    mxp, myp = mx + 2, my + 2
    Nc = mx * my
    BH = B * H
    GPAD = ((Nglo + 7) // 8) * 8      # pad the global key slot to a sublane tile

    # ---- fused input projections: [scale*Wq | Wkv | scale*Wq_g | Wkv_g] ------
    y = _fused_linear(
        x.reshape(B * N, C),
        [scale * params['wq'], params['wkv'],
         scale * params['wq_g'], params['wkv_g']],
        [scale * params['bq'], params['bkv'],
         scale * params['bq_g'], params['bkv_g']]).reshape(B, N, 6 * C)

    def heads(t):                       # (B, n, C) -> (B*H, n, M)
        n = t.shape[1]
        return t.reshape(B, n, H, M).transpose(0, 2, 1, 3).reshape(BH, n, M)

    q_loc = heads(y[:, Nglo:, 0 * C:1 * C])     # already scaled
    k_bh = heads(y[..., 1 * C:2 * C])
    v_bh = heads(y[..., 2 * C:3 * C])
    qg = heads(y[:, :Nglo, 3 * C:4 * C])        # already scaled
    kgf = heads(y[..., 4 * C:5 * C])
    vgf = heads(y[..., 5 * C:6 * C])

    def to_chunk_img(t):                # (BH, Nloc, M) -> (BH, mx, my, W2, M)
        img = t.reshape(BH, nx, ny, M)
        img = jnp.pad(img, ((0, 0), (0, padx), (0, pady), (0, 0)))
        img = img.reshape(BH, mx, W, my, W, M).transpose(0, 1, 3, 2, 4, 5)
        return img.reshape(BH, mx, my, W2, M)

    def halo(t):                        # zero halo of one chunk on each side
        return jnp.pad(to_chunk_img(t),
                       ((0, 0), (1, 1), (1, 1), (0, 0), (0, 0))
                       ).reshape(BH, mxp * myp, W2, M)

    q_ch = to_chunk_img(q_loc).reshape(BH, Nc, W2, M)
    k_img = halo(k_bh[:, Nglo:])
    v_img = halo(v_bh[:, Nglo:])
    k_glo = jnp.pad(k_bh[:, :Nglo], ((0, 0), (0, GPAD - Nglo), (0, 0)))
    v_glo = jnp.pad(v_bh[:, :Nglo], ((0, 0), (0, GPAD - Nglo), (0, 0)))
    mask = _kernel_mask(mx, my, nx, ny, W, Nglo, GPAD)

    o_loc, o_glo = attention_pallas(q_ch, k_img, v_img, k_glo, v_glo, mask,
                                    qg, kgf, vgf, mxp, myp)

    # reassemble chunks -> image, crop padding, fold heads
    out_img = o_loc.reshape(BH, mx, my, W, W, M).transpose(0, 1, 3, 2, 4, 5)
    out_img = out_img.reshape(BH, mx * W, my * W, M)
    x1 = out_img[:, :nx, :ny].reshape(B, H, Nloc, M).transpose(0, 2, 1, 3)
    x1 = x1.reshape(B, Nloc, C)
    x0 = o_glo.reshape(B, H, Nglo, M).transpose(0, 2, 1, 3).reshape(B, Nglo, C)

    # ---- fused output projections: rows [global | local] x [Wproj_g | Wproj] -
    z = _fused_linear(jnp.concatenate([x0, x1], axis=1).reshape(B * N, C),
                      [params['wproj_g'], params['wproj']],
                      [params['bproj_g'], params['bproj']]).reshape(B, N, 2 * C)
    # attn_drop / proj_drop have p=0.0 -> identity
    return jnp.concatenate([z[:, :Nglo, :C], z[:, Nglo:, C:]], axis=1)


# ------------------------------- forward (pure-JAX reference) -----------------
def _forward_reference(x, nx, ny, params):
    B, N, C = x.shape
    H, M, W, Nglo = NUM_HEADS, HEAD_DIM, WINDOW, NGLO
    scale = M ** (-0.5)
    W2 = W * W
    Nloc = nx * ny
    assert Nglo + Nloc == N, "Global dimension does not match!"
    padx = (W - nx % W) % W
    pady = (W - ny % W) % W
    mx, my = (nx + padx) // W, (ny + pady) // W
    Nc = mx * my
    BH = B * H

    def linear(x2d, w, b):
        return jnp.dot(x2d, w, precision=HI) + b[None, :]

    q = scale * linear(x[:, Nglo:].reshape(B * Nloc, C), params['wq'], params['bq'])
    q = q.reshape(B, Nloc, H, M).transpose(0, 2, 1, 3)
    kv = linear(x.reshape(B * N, C), params['wkv'], params['bkv'])
    kv = kv.reshape(B, N, 2, H, M).transpose(2, 0, 3, 1, 4)
    k, v = kv[0], kv[1]
    k_glo = k[:, :, :Nglo].reshape(BH, Nglo, M)
    v_glo = v[:, :, :Nglo].reshape(BH, Nglo, M)

    def to_chunks(t):
        img = t.reshape(BH, nx, ny, M)
        img = jnp.pad(img, ((0, 0), (0, padx), (0, pady), (0, 0)))
        img = img.reshape(BH, mx, W, my, W, M).transpose(0, 1, 3, 2, 4, 5)
        return img.reshape(BH, Nc, W2, M)

    def gather_nbh(ch):
        g = ch.reshape(BH, mx, my, W2, M)
        g = jnp.pad(g, ((0, 0), (1, 1), (1, 1), (0, 0), (0, 0)))
        nbh = [g[:, 1 + dm:1 + dm + mx, 1 + dn:1 + dn + my]
               for dm in (-1, 0, 1) for dn in (-1, 0, 1)]
        return jnp.stack(nbh, axis=3).reshape(BH, Nc, 9 * W2, M)

    q_ch = to_chunks(q)
    k_nbh = gather_nbh(to_chunks(k[:, :, Nglo:]))
    v_nbh = gather_nbh(to_chunks(v[:, :, Nglo:]))
    loc_mask = jnp.asarray(_local_key_validity(mx, my, nx, ny, W))

    s_loc = jnp.einsum('bcqd,bckd->bcqk', q_ch, k_nbh, precision=HI)
    s_loc = s_loc + loc_mask[None, :, None, :]
    s_glo = jnp.einsum('bcqd,bgd->bcqg', q_ch, k_glo, precision=HI)
    s = jnp.concatenate([s_glo, s_loc], axis=-1)
    p = jax.nn.softmax(s - jnp.max(s, axis=-1, keepdims=True), axis=-1)
    out_ch = (jnp.einsum('bcqk,bckd->bcqd', p[..., Nglo:], v_nbh, precision=HI)
              + jnp.einsum('bcqg,bgd->bcqd', p[..., :Nglo], v_glo, precision=HI))

    out_img = out_ch.reshape(BH, mx, my, W, W, M).transpose(0, 1, 3, 2, 4, 5)
    out_img = out_img.reshape(BH, mx * W, my * W, M)
    x1 = out_img[:, :nx, :ny].reshape(B, H, Nloc, M).transpose(0, 2, 1, 3)
    x1 = x1.reshape(B, Nloc, C)
    x1 = linear(x1.reshape(B * Nloc, C), params['wproj'], params['bproj'])
    x1 = x1.reshape(B, Nloc, C)

    qg = scale * linear(x[:, :Nglo].reshape(B * Nglo, C),
                        params['wq_g'], params['bq_g'])
    qg = qg.reshape(B, Nglo, H, M).transpose(0, 2, 1, 3).reshape(BH, Nglo, M)
    kvg = linear(x.reshape(B * N, C), params['wkv_g'], params['bkv_g'])
    kvg = kvg.reshape(B, N, 2, H, M).transpose(2, 0, 3, 1, 4)
    kgf = kvg[0].reshape(BH, N, M)
    vgf = kvg[1].reshape(BH, N, M)
    s0 = jnp.einsum('bgd,bnd->bgn', qg, kgf, precision=HI)
    p0 = jax.nn.softmax(s0 - jnp.max(s0, axis=-1, keepdims=True), axis=-1)
    x0 = jnp.einsum('bgn,bnd->bgd', p0, vgf, precision=HI)
    x0 = x0.reshape(B, H, Nglo, M).transpose(0, 2, 1, 3).reshape(B, Nglo, C)
    x0 = linear(x0.reshape(B * Nglo, C), params['wproj_g'], params['bproj_g'])
    x0 = x0.reshape(B, Nglo, C)
    return jnp.concatenate([x0, x1], axis=1)


def forward(x, nx, ny, params, use_pallas=True):
    """Long2DSCSelfAttention.forward(x, nx, ny). x: (B, Nglo + nx*ny, C)."""
    if use_pallas:
        return _forward_pallas(x, nx, ny, params)
    return _forward_reference(x, nx, ny, params)


def init_params(key, dim):
    ks = jax.random.split(key, 8)

    def w(k, shape, std=0.1):
        return (std * jax.random.normal(k, shape)).astype(jnp.float32)

    zeros = lambda n: jnp.zeros((n,), jnp.float32)
    # nn.Linear weights stored as (in, out); qkv_bias=False -> zero bias for q/kv
    return {
        'wq': w(ks[0], (dim, dim)),        'bq': zeros(dim),
        'wkv': w(ks[1], (dim, 2 * dim)),   'bkv': zeros(2 * dim),
        'wproj': w(ks[2], (dim, dim)),     'bproj': w(ks[3], (dim,)),
        'wq_g': w(ks[4], (dim, dim)),      'bq_g': zeros(dim),
        'wkv_g': w(ks[5], (dim, 2 * dim)), 'bkv_g': zeros(2 * dim),
        'wproj_g': w(ks[6], (dim, dim)),   'bproj_g': w(ks[7], (dim,)),
    }


if __name__ == "__main__":
    B = 2
    nx, ny = 6, 6                    # local token grid (pads to 8x8 with W=4)
    Nloc = nx * ny
    N = NGLO + Nloc                  # 37 tokens total

    key = jax.random.PRNGKey(0)
    kx, kp = jax.random.split(key)
    x = jax.random.normal(kx, (B, N, DIM), dtype=jnp.float32)
    params = init_params(kp, DIM)

    out = forward(x, nx, ny, params, use_pallas=True)
    out = jax.block_until_ready(out)
    assert out.shape == (B, N, DIM)

    ref = forward(x, nx, ny, params, use_pallas=False)
    ref = jax.block_until_ready(ref)
    err = float(jnp.max(jnp.abs(out - ref)))
    # Tolerance covers multi-pass f32 MXU matmuls and the approximate
    # EUP reciprocal (pl.reciprocal approx=True) used for the softmax
    # normalization; any structural/masking bug would show up as O(0.1-1).
    assert err < 5e-3, f"mismatch vs pure-JAX reference: {err}"

    print("KERNEL_OK")
</pallas_src>

<mosaic_0001>
module attributes {stable_mosaic.version = 11 : i64} {
  func.func @_linear_kernel(%arg0: i32, %arg1: memref<74x32xf32, #tpu.memory_space<vmem>>, %arg2: memref<32x256xf32, #tpu.memory_space<vmem>>, %arg3: memref<1x256xf32, #tpu.memory_space<vmem>>, %arg4: memref<74x256xf32, #tpu.memory_space<vmem>>) attributes {dimension_semantics = [#tpu.dimension_semantics<arbitrary>], iteration_bounds = array<i64: 1>, scalar_prefetch = 0 : i64, scratch_operands = 0 : i64, tpu.core_type = #tpu.core_type<tc>, window_params = [{pipeline_mode = #tpu.pipeline_mode<synchronous>, transform_indices = @transform_0, window_bounds = array<i64: 74, 32>}, {pipeline_mode = #tpu.pipeline_mode<synchronous>, transform_indices = @transform_1, window_bounds = array<i64: 32, 256>}, {pipeline_mode = #tpu.pipeline_mode<synchronous>, transform_indices = @transform_2, window_bounds = array<i64: 1, 256>}, {pipeline_mode = #tpu.pipeline_mode<synchronous>, transform_indices = @transform_3, window_bounds = array<i64: 74, 256>}]} {
    %c0 = arith.constant 0 : index
    %c0_0 = arith.constant 0 : index
    %0 = vector.load %arg1[%c0, %c0_0] : memref<74x32xf32, #tpu.memory_space<vmem>>, vector<74x32xf32>
    %c0_1 = arith.constant 0 : index
    %c0_2 = arith.constant 0 : index
    %1 = vector.load %arg2[%c0_1, %c0_2] : memref<32x256xf32, #tpu.memory_space<vmem>>, vector<32x256xf32>
    %cst = arith.constant dense<0.000000e+00> : vector<74x256xf32>
    %2 = tpu.matmul %0, %1, %cst {dimension_numbers = #tpu.dot_dimension_numbers<[1], [0], [0], [1], [0, 0, 1, 1], [], []>} : vector<74x32xf32>, vector<32x256xf32>, vector<74x256xf32> -> vector<74x256xf32>
    %c0_3 = arith.constant 0 : index
    %c0_4 = arith.constant 0 : index
    %3 = vector.load %arg3[%c0_3, %c0_4] : memref<1x256xf32, #tpu.memory_space<vmem>>, vector<1x256xf32>
    %4 = vector.broadcast %3 : vector<1x256xf32> to vector<74x256xf32>
    %5 = arith.addf %2, %4 : vector<74x256xf32>
    %c0_5 = arith.constant 0 : index
    %c0_6 = arith.constant 0 : index
    %6 = vector.load %arg4[%c0_5, %c0_6] : memref<74x256xf32, #tpu.memory_space<vmem>>, vector<74x256xf32>
    tpu.vector_store %arg4[%c0_5, %c0_6], %5 {strides = array<i32>} : memref<74x256xf32, #tpu.memory_space<vmem>>, vector<74x256xf32>,
    return
  }
  func.func @transform_0(%arg0: i32) -> (i32, i32) {
    %c0_i32 = arith.constant 0 : i32
    %c0_i32_0 = arith.constant 0 : i32
    %c0_i32_1 = arith.constant 0 : i32
    return %c0_i32, %c0_i32_0 : i32, i32
  }
  func.func @transform_1(%arg0: i32) -> (i32, i32) {
    %c0_i32 = arith.constant 0 : i32
    %c0_i32_0 = arith.constant 0 : i32
    %c0_i32_1 = arith.constant 0 : i32
    return %c0_i32, %c0_i32_0 : i32, i32
  }
  func.func @transform_2(%arg0: i32) -> (i32, i32) {
    %c0_i32 = arith.constant 0 : i32
    %c0_i32_0 = arith.constant 0 : i32
    %c0_i32_1 = arith.constant 0 : i32
    return %c0_i32, %c0_i32_0 : i32, i32
  }
  func.func @transform_3(%arg0: i32) -> (i32, i32) {
    %c0_i32 = arith.constant 0 : i32
    %c0_i32_0 = arith.constant 0 : i32
    %c0_i32_1 = arith.constant 0 : i32
    return %c0_i32, %c0_i32_0 : i32, i32
  }
}

</mosaic_0001>

<bundles_post_ra>
// kernel: tpu_custom_call.1
= control target key start
LH: loop header
LB: loop body
LE: loop exit
PB: predicated region body
PF: predicated region fallthrough
CT: control target
= control target key end

     0   :  { %v287_v7 = vmov 0.0   ;;  %s390_s0 = inlined_call_operand.vmem [shape: f32[74,32], index: 0, kind: input, shape index: {}]   ;;  %s391_s1 = inlined_call_operand.vmem [shape: f32[32,256], index: 1, kind: input, shape index: {}]   ;;  %s392_s2 = inlined_call_operand.vmem [shape: f32[1,256], index: 2, kind: input, shape index: {}]   ;;  %s393_s3 = inlined_call_operand.hbm [shape: f32[74,256], index: 3, kind: output, shape index: {}]  }
   0x1   :  { %v26_v0 = vld [vmem:[%s391_s1 + $0x8] sm:$0xff]  ;;  %v28_v1 = vld [vmem:[%s391_s1 + $0x18] sm:$0xff]  ;;  %v25_v2 = vld [vmem:[%s391_s1] sm:$0xff]  ;;  %140 = vmatprep.mubr.f32.mxu0 %v287_v7  ;;  %170 = vmatprep.mubr.f32.mxu1 %v287_v7 }
   0x2   :  { %v247_v3 = vpack.c.bf16 %v28_v1, %v26_v0  ;;  %v27_v4 = vld [vmem:[%s391_s1 + $0x10] sm:$0xff]  ;;  %v30_v5 = vld [vmem:[%s391_s1 + $0x28] sm:$0xff]  ;;  %v32_v6 = vld [vmem:[%s391_s1 + $0x38] sm:$0xff] }
   0x3   :  { %v249_v8 = vpack.c.bf16 %v27_v4, %v25_v2  ;;  %v251_v9 = vpack.c.bf16 %v32_v6, %v30_v5  ;;  %v29_v10 = vld [vmem:[%s391_s1 + $0x20] sm:$0xff]  ;;  %v31_v11 = vld [vmem:[%s391_s1 + $0x30] sm:$0xff] }
   0x4   :  { %248 = vmatprep.subr.bf16.mxu0 %v247_v3  ;;  %255 = vmatprep.subr.bf16.mxu1 %v247_v3  ;;  %v253_v12 = vpack.c.bf16 %v31_v11, %v29_v10 }
   0x5   :  { %250 = vmatpush1.bf16.msra.mxu0 %v249_v8  ;;  %257 = vmatpush1.bf16.msra.mxu1 %v249_v8 }
   0x6   :  { %252 = vmatprep.subr.bf16.mxu0 %v251_v9  ;;  %256 = vmatprep.subr.bf16.mxu1 %v251_v9 }
   0x7   :  { %8 = vsyncpa [#allocation3], 0  ;;  %v15_v13 = vld [vmem:[%s390_s0] sm:$0xff]  ;;  %vm45_vm0 = vcmask 261120   ;;  %v20_v14 = vld [vmem:[%s390_s0 + $0x28] sm:$0xff]  ;;  %v35_v23 = vlaneseq }
   0x8   :  { %v16_v15 = vld [vmem:[%s390_s0 + $0x8] sm:$0xff]  ;;  %v21_v16 = vld [vmem:[%s390_s0 + $0x30] sm:$0xff]  ;;  %v22_v18 = vld [vmem:[%s390_s0 + $0x38] sm:$0xff] }
   0x9   :  { %254 = vmatpush1.bf16.msra.mxu0 %v253_v12  ;;  %258 = vmatpush1.bf16.msra.mxu1 %v253_v12  ;;  %v17_v17 = vld [vmem:[%s390_s0 + $0x10] sm:$0xff]  ;;  %v18_v19 = vld [vmem:[%s390_s0 + $0x18] sm:$0xff]  ;;  %v23_v20 = vld [vmem:[%s390_s0 + $0x40] sm:$0xff]  ;;  %v36_v24 = vshrl.u32 %v35_v23, 7 }
   0xa   :  { %v19_v21 = vld [vmem:[%s390_s0 + $0x20] sm:$0xff]  ;;  %v24_v22 = vld [vmem:[%s390_s0 + $0x48] sm:$0x3]  ;;  %s288_s0 = smov [#allocation2]  }
   0xb   :  { %v37_v25 = vsub.s32 0, %v36_v24  ;;  %v33_v26 = vld [vmem:[%s392_s2] sm:$0x3]  ;;  %v41_v27 = vsub.s32 1, %v36_v24  ;;  %s226_s2 = sshll.u32 %s288_s0, 4  ;;  %s227_s2 = int_to_ptr.vmem [resolvable:$true] %s226_s2 }
   0xc   :  { %237 = vmatmul.mubr.msk.f32.vlgmr.msra.gmra.mrb[0].mxu0 %vm45_vm0, %v15_v13  ;;  %242 = vmatmul.mubr.msk.f32.vlgmr.msra.gmra.mrb[0].mxu1 %vm45_vm0, %v20_v14  ;;  %s263_s22 = scalar_lea.vmem %s227_s2, 2560  ;;  %p268_p1 = scmp.lt.s32.totalorder %s227_s2, %s227_s2 }
   0xd   :  { %146 = vmatprep.mubr.f32.mxu0 %v287_v7  ;;  %176 = vmatprep.mubr.f32.mxu1 %v287_v7  ;;  %v38_v28 = vrot.slane %v33_v26, %v37_v25  ;;  %v42_v29 = vrot.slane %v33_v26, %v41_v27  ;;  %p264_p0 = scmp.ne.s32.totalorder %s227_s2, %s263_s22  ;;  %p269_p2 = scmp.lt.s32.totalorder %s263_s22, %s263_s22 }
   0xf   :  { %p270_p3 = por %p269_p2, %p268_p1 }
  0x10   :  { %238 = vmatmul.mubr.msk.f32.gmra.mrb[2].mxu0 %vm45_vm0, %v16_v15  ;;  %243 = vmatmul.mubr.msk.f32.gmra.mrb[2].mxu1 %vm45_vm0, %v21_v16 }
  0x11   :  { %152 = vmatprep.mubr.f32.mxu0 %v287_v7  ;;  %182 = vmatprep.mubr.f32.mxu1 %v287_v7  ;;  %p271_p4 = pnand %p270_p3, %p264_p0 }
  0x14   :  { %239 = vmatmul.mubr.msk.f32.gmra.mrb[4].mxu0 %vm45_vm0, %v17_v17  ;;  %244 = vmatmul.mubr.msk.f32.gmra.mrb[4].mxu1 %vm45_vm0, %v22_v18 }
  0x15   :  { %158 = vmatprep.mubr.f32.mxu0 %v287_v7  ;;  %188 = vmatprep.mubr.f32.mxu1 %v287_v7 }
  0x18   :  { %240 = vmatmul.mubr.msk.f32.gmra.mrb[6].mxu0 %vm45_vm0, %v18_v19  ;;  %245 = vmatmul.mubr.msk.f32.gmra.mrb[6].mxu1 %vm45_vm0, %v23_v20 }
  0x19   :  { %164 = vmatprep.mubr.f32.mxu0 %v287_v7  ;;  %194 = vmatprep.mubr.f32.mxu1 %v287_v7 }
  0x1c   :  { %241 = vmatmul.mubr.msk.f32.gmra.mrb[8].mxu0 %vm45_vm0, %v19_v21  ;;  %246 = vmatmul.mubr.msk.f32.gmra.mrb[8].mxu1 %vm45_vm0, %v24_v22 }
  0xdf   :  { %v142_v30 = vpop.f32.mrb[0].mxu0  ;;  %v172_v31 = vpop.f32.mrb[0].mxu1 }
  0xe0   :  { %v143_v32 = vadd.f32 %v142_v30, %v38_v28  ;;  %v173_v33 = vadd.f32 %v172_v31, %v38_v28  ;;  %v144_v34 = vpop.f32.mrb[1].mxu0  ;;  %v174_v35 = vpop.f32.mrb[1].mxu1 }
  0xe1   :  { %v145_v36 = vadd.f32 %v144_v34, %v42_v29  ;;  %v175_v37 = vadd.f32 %v174_v35, %v42_v29 }
  0xe2   :  { %201 = vst [vmem:[#allocation2] sm:$0xff] %v143_v32  ;;  %211 = vst [vmem:[#allocation2 + $0x50] sm:$0xff] %v173_v33 }
  0xe3   :  { %202 = vst [vmem:[#allocation2 + $0x8] sm:$0xff] %v145_v36  ;;  %212 = vst [vmem:[#allocation2 + $0x58] sm:$0xff] %v175_v37  ;;  %v148_v38 = vpop.f32.mrb[2].mxu0  ;;  %v178_v39 = vpop.f32.mrb[2].mxu1 }
  0xe4   :  { %v149_v40 = vadd.f32 %v148_v38, %v38_v28  ;;  %v179_v41 = vadd.f32 %v178_v39, %v38_v28  ;;  %v150_v42 = vpop.f32.mrb[3].mxu0  ;;  %v180_v43 = vpop.f32.mrb[3].mxu1 }
  0xe5   :  { %v151_v44 = vadd.f32 %v150_v42, %v42_v29  ;;  %v181_v45 = vadd.f32 %v180_v43, %v42_v29 }
  0xe6   :  { %203 = vst [vmem:[#allocation2 + $0x10] sm:$0xff] %v149_v40  ;;  %213 = vst [vmem:[#allocation2 + $0x60] sm:$0xff] %v179_v41 }
  0xe7   :  { %204 = vst [vmem:[#allocation2 + $0x18] sm:$0xff] %v151_v44  ;;  %214 = vst [vmem:[#allocation2 + $0x68] sm:$0xff] %v181_v45  ;;  %v154_v46 = vpop.f32.mrb[4].mxu0  ;;  %v184_v47 = vpop.f32.mrb[4].mxu1 }
  0xe8   :  { %v155_v48 = vadd.f32 %v154_v46, %v38_v28  ;;  %v185_v49 = vadd.f32 %v184_v47, %v38_v28  ;;  %v156_v50 = vpop.f32.mrb[5].mxu0  ;;  %v186_v51 = vpop.f32.mrb[5].mxu1 }
  0xe9   :  { %v157_v52 = vadd.f32 %v156_v50, %v42_v29  ;;  %v187_v53 = vadd.f32 %v186_v51, %v42_v29 }
  0xea   :  { %205 = vst [vmem:[#allocation2 + $0x20] sm:$0xff] %v155_v48  ;;  %215 = vst [vmem:[#allocation2 + $0x70] sm:$0xff] %v185_v49 }
  0xeb   :  { %206 = vst [vmem:[#allocation2 + $0x28] sm:$0xff] %v157_v52  ;;  %216 = vst [vmem:[#allocation2 + $0x78] sm:$0xff] %v187_v53  ;;  %v160_v54 = vpop.f32.mrb[6].mxu0  ;;  %v190_v55 = vpop.f32.mrb[6].mxu1 }
  0xec   :  { %v161_v56 = vadd.f32 %v160_v54, %v38_v28  ;;  %v191_v57 = vadd.f32 %v190_v55, %v38_v28  ;;  %v162_v58 = vpop.f32.mrb[7].mxu0  ;;  %v192_v59 = vpop.f32.mrb[7].mxu1 }
  0xed   :  { %v163_v60 = vadd.f32 %v162_v58, %v42_v29  ;;  %v193_v61 = vadd.f32 %v192_v59, %v42_v29 }
  0xee   :  { %207 = vst [vmem:[#allocation2 + $0x30] sm:$0xff] %v161_v56  ;;  %217 = vst [vmem:[#allocation2 + $0x80] sm:$0xff] %v191_v57 }
  0xef   :  { %208 = vst [vmem:[#allocation2 + $0x38] sm:$0xff] %v163_v60  ;;  %218 = vst [vmem:[#allocation2 + $0x88] sm:$0xff] %v193_v61  ;;  %v166_v62 = vpop.f32.mrb[8].mxu0  ;;  %v196_v63 = vpop.f32.mrb[8].mxu1 }
  0xf0   :  { %v167_v0 = vadd.f32 %v166_v62, %v38_v28  ;;  %v197_v1 = vadd.f32 %v196_v63, %v38_v28  ;;  %v168_v2 = vpop.f32.mrb[9].mxu0  ;;  %v198_v3 = vpop.f32.mrb[9].mxu1 }
  0xf1   :  { %v169_v4 = vadd.f32 %v168_v2, %v42_v29  ;;  %v199_v5 = vadd.f32 %v198_v3, %v42_v29 }
  0xf2   :  { %209 = vst [vmem:[#allocation2 + $0x40] sm:$0xff] %v167_v0  ;;  %219 = vst [vmem:[#allocation2 + $0x90] sm:$0x3] %v197_v1 }
  0xf3   :  { %210 = vst [vmem:[#allocation2 + $0x48] sm:$0xff] %v169_v4  ;;  %220 = vst [vmem:[#allocation2 + $0x98] sm:$0x3] %v199_v5 }
  0xf4   :  { %274 = shalt.err (!%p271_p4)
}
  0xf5   :  { %s275_s25 = scalar_lea.hbm %s393_s3, 2560 }
  0xf6   :  { %p276_p5 = scmp.ne.s32.totalorder %s393_s3, %s275_s25  ;;  %p279_p6 = scmp.lt.u32.totalorder %s275_s25, %s393_s3 }
  0xf8   :  { %p281_p7 = pnand %p279_p6, %p276_p5 }
  0xfa   :  { %284 = shalt.err (!%p281_p7)
}
  0xfb   :  { %s289_s30 = smov 256   ;;  %s290_s4 = smov 16  }
  0xfc   :  { %232 = dma.vmem_to_hbm [thread:$0]  %s227_s2, 2560, %s393_s3, [#allocation3], %s289_s30, %s289_s30, %s290_s4  }
  0xfd   :  { %285 = dma.done.wait [#allocation3], 2560  }
  0xfe   :  { %286 = vsyncadd [#allocation3], 4294964736 }
  0xff   :  { %236 = vsyncpa [#allocation3], 1 }

</bundles_post_ra>
